<compile_context>
chip_gen: v7x
topology: tpu7x:2x2x1
jax: 0.10.0
libtpu: 0.0.40
codegen_flags: <defaults>
</compile_context>

<pallas_src>
import functools

import numpy as np

import jax
import jax.numpy as jnp
from jax.experimental import pallas as pl
from jax.experimental.pallas import tpu as pltpu


def _round_up(n, m):
    return ((n + m - 1) // m) * m


def _bootstrapped_kernel(x_ref, idx_ref, head_ids_ref, red_ref,
                         wb1_ref, bb1_ref, wb2_ref, bb2_ref,
                         wa_ref, ba_ref, wl_ref, bl_ref,
                         o_ref):
    """Fused base MLP -> append_fc -> last linear -> per-row head gather."""
    f32, bf16 = jnp.float32, jnp.bfloat16

    # x is DMA'd as f32 and cast to bf16 in VMEM (VPU filler hidden under DMA).
    x = x_ref[...].astype(bf16)

    # --- base MLP: fc -> relu -> fc -> relu (bf16 MXU, f32 accumulate) ---
    h = jnp.dot(x, wb1_ref[...], preferred_element_type=f32) + bb1_ref[...]
    h = jnp.maximum(h, 0.0).astype(bf16)
    h = jnp.dot(h, wb2_ref[...], preferred_element_type=f32) + bb2_ref[...]
    h = jnp.maximum(h, 0.0).astype(bf16)

    # --- append_fc0 -> relu ---
    h = jnp.dot(h, wa_ref[...], preferred_element_type=f32) + ba_ref[...]
    h = jnp.maximum(h, 0.0).astype(bf16)

    # --- last linear: [TB, O*H] (stays in VMEM; never written to HBM) ---
    out_full = jnp.dot(h, wl_ref[...], preferred_element_type=f32) + bl_ref[...]

    # --- in-kernel bootstrapped head gather ---
    #   selected[b, o] = out_full[b, o*H + idx[b]]
    # head_ids[0, c] = c % H  -> per-row mask (VPU compare/select),
    # red[c, o] = (c // H == o) -> group-sum via a tiny (free) matmul.
    mask = head_ids_ref[...] == idx_ref[...]      # (1,OH) vs (TB,1) -> (TB,OH)
    masked = jnp.where(mask, out_full, 0.0)
    o_ref[...] = jnp.dot(masked, red_ref[...],
                         preferred_element_type=f32).astype(o_ref.dtype)


def prepare_params(params):
    """One-time cast outside the hot path: weights->bf16, biases->f32 [1,n]."""
    prepared = {}
    for k, v in params.items():
        if k.startswith("w"):
            prepared[k] = jnp.asarray(v, dtype=jnp.bfloat16)
        else:
            prepared[k] = jnp.asarray(v, dtype=jnp.float32).reshape(1, -1)
    return prepared


def bootstrapped_net_forward(x, idx, params, *, origin_output_shape, head_num,
                             batch_tile=2048):
    """x: [B, D_in], idx: [B] int -> [B, origin_output_shape] float32."""
    B, D_in = x.shape
    O = origin_output_shape
    H = head_num
    OH = O * H

    # ---- batch tile selection ----
    TB = min(batch_tile, B)
    if TB == B and B >= 2048:
        # Guarantee >=2 grid steps so both v7x TensorCores get work
        # (harmless extra step on single-TC v5e/v6e at these sizes).
        TB = _round_up(pl.cdiv(B, 2), 8)
    if TB != B:
        TB = min(_round_up(TB, 8), 8 * pl.cdiv(B, 8))  # (8,128)/full-dim rule
        TB = min(TB, B) if TB >= B else TB
        if TB >= B:
            TB = B
    grid = (pl.cdiv(B, TB),)

    # ---- dtype plumbing (no-ops when params were pre-cast via prepare_params) ----
    _as = lambda a, dt: a if a.dtype == dt else a.astype(dt)
    wb1, wb2, wa, wl = (_as(params[k], jnp.bfloat16)
                        for k in ("wb1", "wb2", "wa", "wl"))
    bb1, bb2, ba, bl = (_as(params[k], jnp.float32).reshape(1, -1)
                        for k in ("bb1", "bb2", "ba", "bl"))
    x_in = _as(x, jnp.float32)                      # f32 straight into the kernel
    idx2d = _as(idx, jnp.int32).reshape(B, 1)

    # Static gather helpers (compile-time constants, tiny & VMEM-resident).
    head_ids = jnp.asarray((np.arange(OH, dtype=np.int32) % H)[None, :])   # (1, OH)
    red = jnp.asarray(((np.arange(OH)[:, None] // H)
                       == np.arange(O)[None, :]).astype(np.float32))        # (OH, O)

    batch_map = lambda i: (i, 0)
    resident = lambda i: (0, 0)
    full = lambda a: pl.BlockSpec(a.shape, resident)

    h1, h2, ha = wb1.shape[1], wb2.shape[1], wa.shape[1]
    flops = 2 * B * (D_in * h1 + h1 * h2 + h2 * ha + ha * OH + OH * O)
    bytes_accessed = (B * D_in * 4              # x (f32 in)
                      + B * 4                   # idx
                      + B * O * 4               # gathered output
                      + sum(a.size * 2 for a in (wb1, wb2, wa, wl))
                      + sum(a.size * 4 for a in (bb1, bb2, ba, bl))
                      + head_ids.size * 4 + red.size * 4)
    cost = pl.CostEstimate(flops=int(flops), transcendentals=0,
                           bytes_accessed=int(bytes_accessed))

    return pl.pallas_call(
        _bootstrapped_kernel,
        out_shape=jax.ShapeDtypeStruct((B, O), jnp.float32),
        grid=grid,
        in_specs=[
            pl.BlockSpec((TB, D_in), batch_map),   # x (pipelined)
            pl.BlockSpec((TB, 1), batch_map),      # idx (pipelined)
            full(head_ids), full(red),             # gather constants (resident)
            full(wb1), full(bb1),
            full(wb2), full(bb2),
            full(wa), full(ba),
            full(wl), full(bl),
        ],
        out_specs=pl.BlockSpec((TB, O), batch_map),
        compiler_params=pltpu.CompilerParams(
            dimension_semantics=("parallel",),
            vmem_limit_bytes=32 * 1024 * 1024),
        cost_estimate=cost,
    )(x_in, idx2d, head_ids, red,
      wb1, bb1, wb2, bb2, wa, ba, wl, bl)


def _reference_forward(x, idx, params, origin_output_shape, head_num):
    """Pure-JAX f32 reference mirroring the PyTorch module semantics."""
    h = jnp.maximum(x @ params["wb1"] + params["bb1"], 0.0)
    h = jnp.maximum(h @ params["wb2"] + params["bb2"], 0.0)
    h = jnp.maximum(h @ params["wa"] + params["ba"], 0.0)
    out = h @ params["wl"] + params["bl"]                      # [B, O*H]
    out = out.reshape(x.shape[0], origin_output_shape, head_num)
    idx3 = idx[:, None, None].astype(jnp.int32)
    return jnp.take_along_axis(out, idx3, axis=-1)[..., 0]


if __name__ == "__main__":
    # Small shapes consistent with the module.
    B = 8            # batch
    D_IN = 16        # input feature dim
    H1, H2 = 32, 32  # base MLP hidden shapes
    HA = 32          # append_hidden_shapes = [32]
    O = 4            # origin_output_shape
    HEADS = 10       # head_num (default)

    key = jax.random.PRNGKey(0)
    ks = jax.random.split(key, 12)

    def init_w(k, shape, scale=0.1):
        return (scale * jax.random.normal(k, shape)).astype(jnp.float32)

    params = {
        "wb1": init_w(ks[0], (D_IN, H1)),
        "bb1": init_w(ks[1], (1, H1)),
        "wb2": init_w(ks[2], (H1, H2)),
        "bb2": init_w(ks[3], (1, H2)),
        "wa":  init_w(ks[4], (H2, HA)),
        "ba":  init_w(ks[5], (1, HA)),
        "wl":  init_w(ks[6], (HA, O * HEADS)),
        "bl":  init_w(ks[7], (1, O * HEADS)),
    }

    prepared = prepare_params(params)   # one-time bf16/f32 cast outside hot path

    fwd = jax.jit(functools.partial(bootstrapped_net_forward,
                                    origin_output_shape=O, head_num=HEADS))

    x = jax.random.normal(ks[8], (B, D_IN), dtype=jnp.float32)
    idx = jax.random.randint(ks[9], (B,), 0, HEADS, dtype=jnp.int32)
    out = jax.block_until_ready(fwd(x, idx, prepared))
    ref = _reference_forward(x, idx, params, O, HEADS)
    assert out.shape == (B, O)
    assert jnp.allclose(out, ref, atol=1e-2, rtol=1e-2), "mismatch (B=8)"

    # Second check: larger batch exercises the multi-step grid (v7x 2-TC split)
    # and the padded tail-rows path.
    B2 = 2056
    x2 = jax.random.normal(ks[10], (B2, D_IN), dtype=jnp.float32)
    idx2 = jax.random.randint(ks[11], (B2,), 0, HEADS, dtype=jnp.int32)
    out2 = jax.block_until_ready(fwd(x2, idx2, prepared))
    ref2 = _reference_forward(x2, idx2, params, O, HEADS)
    assert out2.shape == (B2, O)
    assert jnp.allclose(out2, ref2, atol=1e-2, rtol=1e-2), "mismatch (B=2056)"

    print("KERNEL_OK")
</pallas_src>

<mosaic_0001>
module attributes {stable_mosaic.version = 11 : i64} {
  func.func @_bootstrapped_kernel(%arg0: i32, %arg1: memref<8x16xf32, #tpu.memory_space<vmem>>, %arg2: memref<8x1xi32, #tpu.memory_space<vmem>>, %arg3: memref<1x40xi32, #tpu.memory_space<vmem>>, %arg4: memref<40x4xf32, #tpu.memory_space<vmem>>, %arg5: memref<16x32xbf16, #tpu.memory_space<vmem>>, %arg6: memref<1x32xf32, #tpu.memory_space<vmem>>, %arg7: memref<32x32xbf16, #tpu.memory_space<vmem>>, %arg8: memref<1x32xf32, #tpu.memory_space<vmem>>, %arg9: memref<32x32xbf16, #tpu.memory_space<vmem>>, %arg10: memref<1x32xf32, #tpu.memory_space<vmem>>, %arg11: memref<32x40xbf16, #tpu.memory_space<vmem>>, %arg12: memref<1x40xf32, #tpu.memory_space<vmem>>, %arg13: memref<8x4xf32, #tpu.memory_space<vmem>>) attributes {dimension_semantics = [#tpu.dimension_semantics<parallel>], iteration_bounds = array<i64: 1>, scalar_prefetch = 0 : i64, scratch_operands = 0 : i64, tpu.core_type = #tpu.core_type<tc>, window_params = [{transform_indices = @transform_0, window_bounds = array<i64: 8, 16>}, {transform_indices = @transform_1, window_bounds = array<i64: 8, 1>}, {pipeline_mode = #tpu.pipeline_mode<synchronous>, transform_indices = @transform_2, window_bounds = array<i64: 1, 40>}, {pipeline_mode = #tpu.pipeline_mode<synchronous>, transform_indices = @transform_3, window_bounds = array<i64: 40, 4>}, {pipeline_mode = #tpu.pipeline_mode<synchronous>, transform_indices = @transform_4, window_bounds = array<i64: 16, 32>}, {pipeline_mode = #tpu.pipeline_mode<synchronous>, transform_indices = @transform_5, window_bounds = array<i64: 1, 32>}, {pipeline_mode = #tpu.pipeline_mode<synchronous>, transform_indices = @transform_6, window_bounds = array<i64: 32, 32>}, {pipeline_mode = #tpu.pipeline_mode<synchronous>, transform_indices = @transform_7, window_bounds = array<i64: 1, 32>}, {pipeline_mode = #tpu.pipeline_mode<synchronous>, transform_indices = @transform_8, window_bounds = array<i64: 32, 32>}, {pipeline_mode = #tpu.pipeline_mode<synchronous>, transform_indices = @transform_9, window_bounds = array<i64: 1, 32>}, {pipeline_mode = #tpu.pipeline_mode<synchronous>, transform_indices = @transform_10, window_bounds = array<i64: 32, 40>}, {pipeline_mode = #tpu.pipeline_mode<synchronous>, transform_indices = @transform_11, window_bounds = array<i64: 1, 40>}, {transform_indices = @transform_12, window_bounds = array<i64: 8, 4>}]} {
    %c0 = arith.constant 0 : index
    %c0_0 = arith.constant 0 : index
    %0 = vector.load %arg1[%c0, %c0_0] : memref<8x16xf32, #tpu.memory_space<vmem>>, vector<8x16xf32>
    %1 = arith.truncf %0 : vector<8x16xf32> to vector<8x16xbf16>
    %c0_1 = arith.constant 0 : index
    %c0_2 = arith.constant 0 : index
    %2 = vector.load %arg5[%c0_1, %c0_2] : memref<16x32xbf16, #tpu.memory_space<vmem>>, vector<16x32xbf16>
    %cst = arith.constant dense<0.000000e+00> : vector<8x32xf32>
    %3 = tpu.matmul %1, %2, %cst {dimension_numbers = #tpu.dot_dimension_numbers<[1], [0], [0], [1], [0, 0, 1, 1], [], []>} : vector<8x16xbf16>, vector<16x32xbf16>, vector<8x32xf32> -> vector<8x32xf32>
    %c0_3 = arith.constant 0 : index
    %c0_4 = arith.constant 0 : index
    %4 = vector.load %arg6[%c0_3, %c0_4] : memref<1x32xf32, #tpu.memory_space<vmem>>, vector<1x32xf32>
    %5 = vector.broadcast %4 : vector<1x32xf32> to vector<8x32xf32>
    %6 = arith.addf %3, %5 : vector<8x32xf32>
    %cst_5 = arith.constant 0.000000e+00 : f32
    %7 = vector.broadcast %cst_5 : f32 to vector<8x32xf32>
    %8 = arith.maximumf %6, %7 : vector<8x32xf32>
    %9 = arith.truncf %8 : vector<8x32xf32> to vector<8x32xbf16>
    %c0_6 = arith.constant 0 : index
    %c0_7 = arith.constant 0 : index
    %10 = vector.load %arg7[%c0_6, %c0_7] : memref<32x32xbf16, #tpu.memory_space<vmem>>, vector<32x32xbf16>
    %cst_8 = arith.constant dense<0.000000e+00> : vector<8x32xf32>
    %11 = tpu.matmul %9, %10, %cst_8 {dimension_numbers = #tpu.dot_dimension_numbers<[1], [0], [0], [1], [0, 0, 1, 1], [], []>} : vector<8x32xbf16>, vector<32x32xbf16>, vector<8x32xf32> -> vector<8x32xf32>
    %c0_9 = arith.constant 0 : index
    %c0_10 = arith.constant 0 : index
    %12 = vector.load %arg8[%c0_9, %c0_10] : memref<1x32xf32, #tpu.memory_space<vmem>>, vector<1x32xf32>
    %13 = vector.broadcast %12 : vector<1x32xf32> to vector<8x32xf32>
    %14 = arith.addf %11, %13 : vector<8x32xf32>
    %cst_11 = arith.constant 0.000000e+00 : f32
    %15 = vector.broadcast %cst_11 : f32 to vector<8x32xf32>
    %16 = arith.maximumf %14, %15 : vector<8x32xf32>
    %17 = arith.truncf %16 : vector<8x32xf32> to vector<8x32xbf16>
    %c0_12 = arith.constant 0 : index
    %c0_13 = arith.constant 0 : index
    %18 = vector.load %arg9[%c0_12, %c0_13] : memref<32x32xbf16, #tpu.memory_space<vmem>>, vector<32x32xbf16>
    %cst_14 = arith.constant dense<0.000000e+00> : vector<8x32xf32>
    %19 = tpu.matmul %17, %18, %cst_14 {dimension_numbers = #tpu.dot_dimension_numbers<[1], [0], [0], [1], [0, 0, 1, 1], [], []>} : vector<8x32xbf16>, vector<32x32xbf16>, vector<8x32xf32> -> vector<8x32xf32>
    %c0_15 = arith.constant 0 : index
    %c0_16 = arith.constant 0 : index
    %20 = vector.load %arg10[%c0_15, %c0_16] : memref<1x32xf32, #tpu.memory_space<vmem>>, vector<1x32xf32>
    %21 = vector.broadcast %20 : vector<1x32xf32> to vector<8x32xf32>
    %22 = arith.addf %19, %21 : vector<8x32xf32>
    %cst_17 = arith.constant 0.000000e+00 : f32
    %23 = vector.broadcast %cst_17 : f32 to vector<8x32xf32>
    %24 = arith.maximumf %22, %23 : vector<8x32xf32>
    %25 = arith.truncf %24 : vector<8x32xf32> to vector<8x32xbf16>
    %c0_18 = arith.constant 0 : index
    %c0_19 = arith.constant 0 : index
    %26 = vector.load %arg11[%c0_18, %c0_19] : memref<32x40xbf16, #tpu.memory_space<vmem>>, vector<32x40xbf16>
    %cst_20 = arith.constant dense<0.000000e+00> : vector<8x40xf32>
    %27 = tpu.matmul %25, %26, %cst_20 {dimension_numbers = #tpu.dot_dimension_numbers<[1], [0], [0], [1], [0, 0, 1, 1], [], []>} : vector<8x32xbf16>, vector<32x40xbf16>, vector<8x40xf32> -> vector<8x40xf32>
    %c0_21 = arith.constant 0 : index
    %c0_22 = arith.constant 0 : index
    %28 = vector.load %arg12[%c0_21, %c0_22] : memref<1x40xf32, #tpu.memory_space<vmem>>, vector<1x40xf32>
    %29 = vector.broadcast %28 : vector<1x40xf32> to vector<8x40xf32>
    %30 = arith.addf %27, %29 : vector<8x40xf32>
    %c0_23 = arith.constant 0 : index
    %c0_24 = arith.constant 0 : index
    %31 = vector.load %arg3[%c0_23, %c0_24] : memref<1x40xi32, #tpu.memory_space<vmem>>, vector<1x40xi32>
    %c0_25 = arith.constant 0 : index
    %c0_26 = arith.constant 0 : index
    %32 = vector.load %arg2[%c0_25, %c0_26] : memref<8x1xi32, #tpu.memory_space<vmem>>, vector<8x1xi32>
    %33 = vector.broadcast %31 : vector<1x40xi32> to vector<8x40xi32>
    %34 = vector.broadcast %32 : vector<8x1xi32> to vector<8x40xi32>
    %35 = arith.cmpi eq, %33, %34 : vector<8x40xi32>
    %cst_27 = arith.constant 0.000000e+00 : f32
    %36 = vector.broadcast %cst_27 : f32 to vector<8x40xf32>
    %37 = arith.select %35, %30, %36 : vector<8x40xi1>, vector<8x40xf32>
    %c0_28 = arith.constant 0 : index
    %c0_29 = arith.constant 0 : index
    %38 = vector.load %arg4[%c0_28, %c0_29] : memref<40x4xf32, #tpu.memory_space<vmem>>, vector<40x4xf32>
    %cst_30 = arith.constant dense<0.000000e+00> : vector<8x4xf32>
    %39 = tpu.matmul %37, %38, %cst_30 {dimension_numbers = #tpu.dot_dimension_numbers<[1], [0], [0], [1], [0, 0, 1, 1], [], []>} : vector<8x40xf32>, vector<40x4xf32>, vector<8x4xf32> -> vector<8x4xf32>
    %c0_31 = arith.constant 0 : index
    %c0_32 = arith.constant 0 : index
    %40 = vector.load %arg13[%c0_31, %c0_32] : memref<8x4xf32, #tpu.memory_space<vmem>>, vector<8x4xf32>
    tpu.vector_store %arg13[%c0_31, %c0_32], %39 {strides = array<i32>} : memref<8x4xf32, #tpu.memory_space<vmem>>, vector<8x4xf32>,
    return
  }
  func.func @transform_0(%arg0: i32) -> (i32, i32) {
    %c0_i32 = arith.constant 0 : i32
    %c0_i32_0 = arith.constant 0 : i32
    return %arg0, %c0_i32 : i32, i32
  }
  func.func @transform_1(%arg0: i32) -> (i32, i32) {
    %c0_i32 = arith.constant 0 : i32
    %c0_i32_0 = arith.constant 0 : i32
    return %arg0, %c0_i32 : i32, i32
  }
  func.func @transform_2(%arg0: i32) -> (i32, i32) {
    %c0_i32 = arith.constant 0 : i32
    %c0_i32_0 = arith.constant 0 : i32
    %c0_i32_1 = arith.constant 0 : i32
    return %c0_i32, %c0_i32_0 : i32, i32
  }
  func.func @transform_3(%arg0: i32) -> (i32, i32) {
    %c0_i32 = arith.constant 0 : i32
    %c0_i32_0 = arith.constant 0 : i32
    %c0_i32_1 = arith.constant 0 : i32
    return %c0_i32, %c0_i32_0 : i32, i32
  }
  func.func @transform_4(%arg0: i32) -> (i32, i32) {
    %c0_i32 = arith.constant 0 : i32
    %c0_i32_0 = arith.constant 0 : i32
    %c0_i32_1 = arith.constant 0 : i32
    return %c0_i32, %c0_i32_0 : i32, i32
  }
  func.func @transform_5(%arg0: i32) -> (i32, i32) {
    %c0_i32 = arith.constant 0 : i32
    %c0_i32_0 = arith.constant 0 : i32
    %c0_i32_1 = arith.constant 0 : i32
    return %c0_i32, %c0_i32_0 : i32, i32
  }
  func.func @transform_6(%arg0: i32) -> (i32, i32) {
    %c0_i32 = arith.constant 0 : i32
    %c0_i32_0 = arith.constant 0 : i32
    %c0_i32_1 = arith.constant 0 : i32
    return %c0_i32, %c0_i32_0 : i32, i32
  }
  func.func @transform_7(%arg0: i32) -> (i32, i32) {
    %c0_i32 = arith.constant 0 : i32
    %c0_i32_0 = arith.constant 0 : i32
    %c0_i32_1 = arith.constant 0 : i32
    return %c0_i32, %c0_i32_0 : i32, i32
  }
  func.func @transform_8(%arg0: i32) -> (i32, i32) {
    %c0_i32 = arith.constant 0 : i32
    %c0_i32_0 = arith.constant 0 : i32
    %c0_i32_1 = arith.constant 0 : i32
    return %c0_i32, %c0_i32_0 : i32, i32
  }
  func.func @transform_9(%arg0: i32) -> (i32, i32) {
    %c0_i32 = arith.constant 0 : i32
    %c0_i32_0 = arith.constant 0 : i32
    %c0_i32_1 = arith.constant 0 : i32
    return %c0_i32, %c0_i32_0 : i32, i32
  }
  func.func @transform_10(%arg0: i32) -> (i32, i32) {
    %c0_i32 = arith.constant 0 : i32
    %c0_i32_0 = arith.constant 0 : i32
    %c0_i32_1 = arith.constant 0 : i32
    return %c0_i32, %c0_i32_0 : i32, i32
  }
  func.func @transform_11(%arg0: i32) -> (i32, i32) {
    %c0_i32 = arith.constant 0 : i32
    %c0_i32_0 = arith.constant 0 : i32
    %c0_i32_1 = arith.constant 0 : i32
    return %c0_i32, %c0_i32_0 : i32, i32
  }
  func.func @transform_12(%arg0: i32) -> (i32, i32) {
    %c0_i32 = arith.constant 0 : i32
    %c0_i32_0 = arith.constant 0 : i32
    return %arg0, %c0_i32 : i32, i32
  }
}

</mosaic_0001>

<bundles_post_ra>
// kernel: bootstrapped_net_forward.1
= control target key start
LH: loop header
LB: loop body
LE: loop exit
PB: predicated region body
PF: predicated region fallthrough
CT: control target
= control target key end

     0   :  { %17 = vsyncpa [#allocation3], 0  ;;  %s959_s0 = inlined_call_operand.vmem [shape: f32[8,16], index: 0, kind: input, shape index: {}]   ;;  %s960_s1 = inlined_call_operand.vmem [shape: s32[8,1], index: 1, kind: input, shape index: {}]   ;;  %s961_s2 = inlined_call_operand.vmem [shape: s32[1,40], index: 2, kind: input, shape index: {}]   ;;  %s962_s3 = inlined_call_operand.vmem [shape: f32[40,4], index: 3, kind: input, shape index: {}]   ;;  %s963_s4 = inlined_call_operand.hbm [shape: bf16[16,32], index: 4, kind: input, shape index: {}]   ;;  %s964_s5 = inlined_call_operand.vmem [shape: f32[1,32], index: 5, kind: input, shape index: {}]   ;;  %s965_s6 = inlined_call_operand.hbm [shape: bf16[32,32], index: 6, kind: input, shape index: {}]   ;;  %s966_s7 = inlined_call_operand.vmem [shape: f32[1,32], index: 7, kind: input, shape index: {}]   ;;  %s967_s8 = inlined_call_operand.hbm [shape: bf16[32,32], index: 8, kind: input, shape index: {}]   ;;  %s968_s9 = inlined_call_operand.hbm [shape: f32[1,32], index: 9, kind: input, shape index: {}]   ;;  %s969_s10 = inlined_call_operand.hbm [shape: bf16[32,40], index: 10, kind: input, shape index: {}]   ;;  %s970_s11 = inlined_call_operand.hbm [shape: f32[1,40], index: 11, kind: input, shape index: {}]   ;;  %s971_s12 = inlined_call_operand.vmem [shape: f32[8,4], index: 12, kind: output, shape index: {}]  }
   0x1   :  { %18 = vsyncpa [#allocation5], 0 }
   0x2   :  { %19 = vsyncpa [#allocation8], 0 }
   0x3   :  { %20 = vsyncpa [#allocation11], 0  ;;  %s729_s21 = smov [#allocation4]   ;;  %s730_s23 = smov [#allocation7]  }
   0x4   :  { %s48_s22 = sshll.u32 %s729_s21, 4  ;;  %s75_s24 = sshll.u32 %s730_s23, 4  ;;  %s49_s22 = int_to_ptr.vmem [resolvable:$true] %s48_s22  ;;  %s806_s24 = int_to_ptr.vmem [resolvable:$true] %s75_s24 }
   0x5   :  { %s589_s27 = scalar_lea.hbm %s965_s6, 256 }
   0x6   :  { %p590_p0 = scmp.ne.s32.totalorder %s965_s6, %s589_s27  ;;  %p593_p1 = scmp.lt.u32.totalorder %s589_s27, %s965_s6 }
   0x8   :  { %p595_p2 = pnand %p593_p1, %p590_p0 }
   0xa   :  { %598 = shalt.err (!%p595_p2)
}
   0xb   :  { %s599_s14 = scalar_lea.vmem %s49_s22, 256  ;;  %p604_p4 = scmp.lt.s32.totalorder %s49_s22, %s49_s22 }
   0xc   :  { %p600_p3 = scmp.ne.s32.totalorder %s49_s22, %s599_s14  ;;  %p605_p5 = scmp.lt.s32.totalorder %s599_s14, %s599_s14 }
   0xe   :  { %p606_p6 = por %p605_p5, %p604_p4 }
  0x10   :  { %p607_p7 = pnand %p606_p6, %p600_p3 }
  0x12   :  { %610 = shalt.err (!%p607_p7)
}
  0x13   :  { %s731_s15 = smov 64   ;;  %s732_s16 = smov 4  }
  0x14   :  { %54 = dma.hbm_to_vmem [thread:$0]  %s965_s6, 256, %s49_s22, [#allocation5], %s731_s15, %s731_s15, %s732_s16  }
  0x15   :  { %s611_s21 = scalar_lea.hbm %s968_s9, 16 }
  0x16   :  { %p612_p8 = scmp.ne.s32.totalorder %s968_s9, %s611_s21  ;;  %p615_p9 = scmp.lt.u32.totalorder %s611_s21, %s968_s9 }
  0x18   :  { %p617_p10 = pnand %p615_p9, %p612_p8 }
  0x1a   :  { %620 = shalt.err (!%p617_p10)
}
  0x1b   :  { %s621_s28 = scalar_lea.vmem %s806_s24, 16  ;;  %s625_s6 = scalar_lea.vmem %s806_s24, 32 }
  0x1c   :  { %p622_p11 = scmp.ne.s32.totalorder %s806_s24, %s621_s28  ;;  %p626_p12 = scmp.lt.s32.totalorder %s806_s24, %s806_s24 }
  0x1d   :  { %p627_p13 = scmp.lt.s32.totalorder %s625_s6, %s621_s28 }
  0x1f   :  { %p628_p0 = por %p627_p13, %p626_p12 }
  0x21   :  { %p629_p1 = pnand %p628_p0, %p622_p11 }
  0x23   :  { %632 = shalt.err (!%p629_p1)
}
  0x24   :  { %78 = dma.hbm_to_vmem [thread:$0]  %s968_s9, 16, %s806_s24, [#allocation8]  }
  0x25   :  { %s733_s30 = smov [#allocation2]   ;;  %s734_s14 = smov [#allocation6]  }
  0x26   :  { %s34_s13 = sshll.u32 %s733_s30, 4  ;;  %s62_s17 = sshll.u32 %s734_s14, 4  ;;  %s35_s13 = int_to_ptr.vmem [resolvable:$true] %s34_s13  ;;  %s841_s17 = int_to_ptr.vmem [resolvable:$true] %s62_s17 }
  0x27   :  { %s633_s20 = scalar_lea.hbm %s963_s4, 128 }
  0x28   :  { %p634_p2 = scmp.ne.s32.totalorder %s963_s4, %s633_s20  ;;  %p637_p3 = scmp.lt.u32.totalorder %s633_s20, %s963_s4 }
  0x2a   :  { %p639_p4 = pnand %p637_p3, %p634_p2 }
  0x2c   :  { %642 = shalt.err (!%p639_p4)
}
  0x2d   :  { %s643_s9 = scalar_lea.vmem %s35_s13, 128  ;;  %p648_p6 = scmp.lt.s32.totalorder %s35_s13, %s35_s13 }
  0x2e   :  { %p644_p5 = scmp.ne.s32.totalorder %s35_s13, %s643_s9  ;;  %p649_p7 = scmp.lt.s32.totalorder %s643_s9, %s643_s9 }
  0x30   :  { %p650_p8 = por %p649_p7, %p648_p6 }
  0x32   :  { %p651_p9 = pnand %p650_p8, %p644_p5 }
  0x34   :  { %654 = shalt.err (!%p651_p9)
}
  0x35   :  { %40 = dma.hbm_to_vmem [thread:$0]  %s963_s4, 128, %s35_s13, [#allocation3], %s731_s15, %s731_s15, %s732_s16  }
  0x36   :  { %s655_s22 = scalar_lea.hbm %s967_s8, 256 }
  0x37   :  { %p656_p10 = scmp.ne.s32.totalorder %s967_s8, %s655_s22  ;;  %p659_p11 = scmp.lt.u32.totalorder %s655_s22, %s967_s8 }
  0x39   :  { %p661_p12 = pnand %p659_p11, %p656_p10 }
  0x3b   :  { %664 = shalt.err (!%p661_p12)
}
  0x3c   :  { %s665_s19 = scalar_lea.vmem %s841_s17, 256  ;;  %p670_p0 = scmp.lt.s32.totalorder %s841_s17, %s841_s17 }
  0x3d   :  { %p666_p13 = scmp.ne.s32.totalorder %s841_s17, %s665_s19  ;;  %p671_p1 = scmp.lt.s32.totalorder %s665_s19, %s665_s19 }
  0x3f   :  { %p672_p2 = por %p671_p1, %p670_p0 }
  0x41   :  { %p673_p3 = pnand %p672_p2, %p666_p13 }
  0x43   :  { %676 = shalt.err (!%p673_p3)
}
  0x44   :  { %68 = dma.hbm_to_vmem [thread:$0]  %s967_s8, 256, %s841_s17, [#allocation5], %s731_s15, %s731_s15, %s732_s16  }
  0x45   :  { %s735_s20 = smov [#allocation9]   ;;  %s736_s23 = smov [#allocation10]  }
  0x46   :  { %s84_s21 = sshll.u32 %s735_s20, 4  ;;  %s97_s25 = sshll.u32 %s736_s23, 4  ;;  %s85_s21 = int_to_ptr.vmem [resolvable:$true] %s84_s21  ;;  %s98_s25 = int_to_ptr.vmem [resolvable:$true] %s97_s25 }
  0x47   :  { %s677_s24 = scalar_lea.hbm %s969_s10, 256 }
  0x48   :  { %p678_p4 = scmp.ne.s32.totalorder %s969_s10, %s677_s24  ;;  %p681_p5 = scmp.lt.u32.totalorder %s677_s24, %s969_s10 }
  0x4a   :  { %p683_p6 = pnand %p681_p5, %p678_p4 }
  0x4c   :  { %686 = shalt.err (!%p683_p6)
}
  0x4d   :  { %s687_s8 = scalar_lea.vmem %s85_s21, 256  ;;  %p692_p8 = scmp.lt.s32.totalorder %s85_s21, %s85_s21 }
  0x4e   :  { %p688_p7 = scmp.ne.s32.totalorder %s85_s21, %s687_s8  ;;  %p693_p9 = scmp.lt.s32.totalorder %s687_s8, %s687_s8 }
  0x50   :  { %p694_p10 = por %p693_p9, %p692_p8 }
  0x52   :  { %p695_p11 = pnand %p694_p10, %p688_p7 }
  0x54   :  { %698 = shalt.err (!%p695_p11)
}
  0x55   :  { %90 = dma.hbm_to_vmem [thread:$0]  %s969_s10, 256, %s85_s21, [#allocation8], %s731_s15, %s731_s15, %s732_s16  }
  0x56   :  { %s699_s18 = scalar_lea.hbm %s970_s11, 16 }
  0x57   :  { %p700_p12 = scmp.ne.s32.totalorder %s970_s11, %s699_s18  ;;  %p703_p13 = scmp.lt.u32.totalorder %s699_s18, %s970_s11 }
  0x59   :  { %p705_p0 = pnand %p703_p13, %p700_p12 }
  0x5b   :  { %708 = shalt.err (!%p705_p0)
}
  0x5c   :  { %s709_s23 = scalar_lea.vmem %s98_s25, 16  ;;  %s713_s26 = scalar_lea.vmem %s98_s25, 32 }
  0x5d   :  { %p710_p1 = scmp.ne.s32.totalorder %s98_s25, %s709_s23  ;;  %p714_p2 = scmp.lt.s32.totalorder %s98_s25, %s98_s25 }
  0x5e   :  { %p715_p3 = scmp.lt.s32.totalorder %s713_s26, %s709_s23 }
  0x60   :  { %p716_p4 = por %p715_p3, %p714_p2 }
  0x62   :  { %p717_p5 = pnand %p716_p4, %p710_p1 }
  0x64   :  { %720 = shalt.err (!%p717_p5)
}
  0x65   :  { %100 = dma.hbm_to_vmem [thread:$0]  %s970_s11, 16, %s98_s25, [#allocation11]  }
  0x66   :  { %721 = dma.done.wait [#allocation3], 128  }
  0x67   :  { %722 = vsyncadd [#allocation3], 4294967168 }
  0x68   :  { %723 = dma.done.wait [#allocation5], 512  }
  0x69   :  { %724 = vsyncadd [#allocation5], 4294966784 }
  0x6a   :  { %725 = dma.done.wait [#allocation8], 272  }
  0x6b   :  { %726 = vsyncadd [#allocation8], 4294967024 }
  0x6c   :  { %727 = dma.done.wait [#allocation11], 16  }
  0x6d   :  { %728 = vsyncadd [#allocation11], 4294967280  ;;  %v737_v0 = vmov 0.0   ;;  %vm738_vm0 = vmmov 0   ;;  %v582_v1 = vld [vmem:[#allocation2] sm:$0xff]   ;;  %vm137_vm1 = vcmask 130048  }
  0x6e   :  { %520 = vmatprep.subr.bf16.mxu0 %v737_v0  ;;  %522 = vmatprep.mubr.msk.bf16.mxu0 %vm738_vm0, %v737_v0  ;;  %v120_v2 = vld [vmem:[%s959_s0] sm:$0xff]  ;;  %v583_v4 = vld [vmem:[#allocation4] sm:$0xff]   ;;  %v584_v5 = vld [vmem:[#allocation4 + $0x8] sm:$0xff]   ;;  %vm206_vm2 = vcmask 261120   ;;  %v739_v29 = vmov 0   ;;  %v740_v30 = vmov 0.0|0.0  }
  0x6f   :  { %526 = vmatprep.subr.bf16.mxu1 %v737_v0  ;;  %530 = vmatprep.mubr.msk.bf16.mxu1 %vm738_vm0, %v737_v0  ;;  %v121_v3 = vpack.c.bf16 %v120_v2, %v120_v2  ;;  %v585_v6 = vld [vmem:[#allocation6] sm:$0xff]   ;;  %v486_v7 = vld [vmem:[%s964_s5] ss:$0 sm:$0xff]  ;;  %v587_v16 = vld [vmem:[#allocation9] sm:$0xff]   ;;  %vm402_vm4 = vcmask 326656   ;;  %vm476_vm5 = vcmask 31744  }
  0x70   :  { %521 = vmatpush3.bf16.msra.mxu0 %v582_v1  ;;  %527 = vmatpush3.bf16.msra.mxu1 %v583_v4  ;;  %v586_v15 = vld [vmem:[#allocation6 + $0x8] sm:$0xff]   ;;  %v588_v25 = vld [vmem:[#allocation9 + $0x8] sm:$0xff]   ;;  %v398_v28 = vld [vmem:[%s962_s3 + $0x8] sm:$0xff] }
  0x71   :  { %534 = vmatprep.subr.bf16.mxu0 %v737_v0  ;;  %528 = vmatprep.subr.bf16.mxu1 %v737_v0  ;;  %v489_v17 = vld [vmem:[%s966_s7] ss:$0 sm:$0xff]  ;;  %v399_v32 = vld [vmem:[%s962_s3 + $0x10] sm:$0xff]  ;;  %v400_v33 = vld [vmem:[%s962_s3 + $0x18] sm:$0xff] }
  0x72   :  { %v387_v26 = vld [vmem:[%s960_s1] sm:$0xff]  ;;  %581 = vset.pattern.permute.xlu0 %v739_v29  ;;  %v567_v34 = vpack.c.bf16 %v400_v33, %v399_v32  ;;  %v493_v35 = vld [vmem:[#allocation7] ss:$0 sm:$0xff]  ;;  %v497_v46 = vld [vmem:[#allocation10] ss:$0 sm:$0xff] }
  0x73   :  { %523 = vmatmul.mubr.msk.bf16.vlgmr.msra.gmra.mrb[0].mxu0 %vm137_vm1, %v121_v3  ;;  %v397_v27 = vld [vmem:[%s962_s3] sm:$0xff]  ;;  %393 = vperm.xlu0 %581, %v387_v26  }
  0x74   :  { %538 = vmatprep.mubr.msk.bf16.mxu0 %vm738_vm0, %v737_v0  ;;  %529 = vmatpush3.bf16.msra.mxu1 %v584_v5  ;;  %v564_v31 = vpack.c.bf16 %v398_v28, %v397_v27  ;;  %v401_v43 = vld [vmem:[%s962_s3 + $0x20] sm:$0xff] }
  0x75   :  { %542 = vmatprep.subr.bf16.mxu1 %v737_v0  ;;  %535 = vmatpush3.bf16.msra.mxu0 %v585_v6  ;;  %v501_v45 = vld [vmem:[%s961_s2] ss:$0 sm:$0xff] }
  0x76   :  { %536 = vmatprep.subr.bf16.mxu0 %v737_v0 }
  0x79   :  { %537 = vmatpush3.bf16.msra.mxu0 %v586_v15 }
  0x7a   :  { %563 = vmatprep.subr.bf16.mxu0 %v740_v30 }
  0xf2   :  { %v394_v44 = vpop.permute.xlu0 %393 }
  0xf3   :  { %vm395_vm3 = vcmp.eq.s32.totalorder %v501_v45, %v394_v44 }
 0x146   :  { %v175_v8 = vpop.f32.mrb[0].mxu0 }
 0x147   :  { %v176_v9 = vadd.f32 %v486_v7, %v175_v8  ;;  %v524_v10 = vpop.f32.mrb[1].mxu0 }
 0x148   :  { %v178_v11 = vpop.f32.mrb[2].mxu0 }
 0x149   :  { %v181_v12 = vmax.f32 %v176_v9, 0.0  ;;  %v525_v13 = vpop.f32.mrb[3].mxu0 }
 0x14b   :  { %v182_v14 = vpack.c.bf16 %v181_v12, %v181_v12 }
 0x14d   :  { %531 = vmatmul.mubr.msk.bf16.vlgmr.msra.gmra.mrb[0].mxu1 %vm206_vm2, %v182_v14 }
 0x14e   :  { %546 = vmatprep.mubr.msk.bf16.mxu1 %vm738_vm0, %v737_v0  ;;  %543 = vmatpush3.bf16.msra.mxu1 %v587_v16 }
 0x14f   :  { %544 = vmatprep.subr.bf16.mxu1 %v737_v0 }
 0x152   :  { %545 = vmatpush3.bf16.msra.mxu1 %v588_v25 }
 0x220   :  { %v244_v18 = vpop.f32.mrb[0].mxu1 }
 0x221   :  { %v245_v19 = vadd.f32 %v489_v17, %v244_v18  ;;  %v532_v20 = vpop.f32.mrb[1].mxu1 }
 0x222   :  { %v247_v21 = vpop.f32.mrb[2].mxu1 }
 0x223   :  { %v250_v22 = vmax.f32 %v245_v19, 0.0  ;;  %v533_v23 = vpop.f32.mrb[3].mxu1 }
 0x225   :  { %v251_v24 = vpack.c.bf16 %v250_v22, %v250_v22 }
 0x227   :  { %539 = vmatmul.mubr.msk.bf16.vlgmr.msra.gmra.mrb[4].mxu0 %vm206_vm2, %v251_v24 }
 0x228   :  { %560 = vmatprep.mubr.msk.f32.mxu0 %vm738_vm0, %v737_v0  ;;  %565 = vmatpush3.bf16.msra.mxu0 %v564_v31 }
 0x229   :  { %566 = vmatprep.subr.bf16.mxu0 %v740_v30 }
 0x22c   :  { %568 = vmatpush3.bf16.msra.mxu0 %v567_v34 }
 0x22d   :  { %558 = vmatprep.subr.mxu0 %v737_v0 }
 0x230   :  { %559 = vmatpush3.msra.mxu0 %v401_v43 }
 0x2fa   :  { %v312_v36 = vpop.f32.mrb[4].mxu0 }
 0x2fb   :  { %v313_v37 = vadd.f32 %v493_v35, %v312_v36  ;;  %v540_v38 = vpop.f32.mrb[5].mxu0 }
 0x2fc   :  { %v315_v39 = vpop.f32.mrb[6].mxu0 }
 0x2fd   :  { %v318_v40 = vmax.f32 %v313_v37, 0.0  ;;  %v541_v41 = vpop.f32.mrb[7].mxu0 }
 0x2ff   :  { %v319_v42 = vpack.c.bf16 %v318_v40, %v318_v40 }
 0x301   :  { %547 = vmatmul.mubr.msk.bf16.vlgmr.msra.gmra.mrb[4].mxu1 %vm206_vm2, %v319_v42 }
 0x3d4   :  { %v380_v47 = vpop.f32.mrb[4].mxu1 }
 0x3d5   :  { %v381_v48 = vadd.f32 %v497_v46, %v380_v47  ;;  %v548_v49 = vpop.f32.mrb[5].mxu1 }
 0x3d6   :  { %v383_v50 = vpop.f32.mrb[6].mxu1 }
 0x3d7   :  { %v396_v51 = vsel %vm395_vm3, %v381_v48, 0.0  ;;  %v549_v52 = vpop.f32.mrb[7].mxu1 }
 0x3d8   :  { %561 = vmatmul.mubr.msk.f32.vlgmr.msra.gmra.mrb[8].mxu0 %vm402_vm4, %v396_v51 }
 0x4ab   :  { %v472_v53 = vpop.f32.mrb[8].mxu0 }
 0x4ac   :  { %477 = vst.msk [vmem:[%s971_s12] sm:$0xff] %vm476_vm5, %v472_v53  ;;  %v562_v54 = vpop.f32.mrb[9].mxu0 }
 0x4ad   :  { %482 = vsyncpa [#allocation3], 1 }
 0x4ae   :  { %483 = vsyncpa [#allocation5], 1 }
 0x4af   :  { %484 = vsyncpa [#allocation8], 1 }
 0x4b0   :  { %485 = vsyncpa [#allocation11], 1 }

</bundles_post_ra>
